<compile_context>
chip_gen: v7x
topology: tpu7x:2x2x1
jax: 0.10.0
libtpu: 0.0.40
codegen_flags: <defaults>
</compile_context>

<pallas_src>
import jax
import jax.numpy as jnp
from jax.experimental import pallas as pl
from jax.experimental.pallas import tpu as pltpu


_LEAKY_SLOPE = 0.01  # PyTorch nn.LeakyReLU default


def _leaky_relu(x, slope=_LEAKY_SLOPE):
    return jnp.where(x > 0, x, slope * x)


def discriminator_kernel(x_ref, w1_ref, b1_ref, w2_ref, b2_ref, w3t_ref, b3_ref,
                         o_ref):
    """One batch tile in native [batch, feature] layout.

    x_ref  : [TILE_B, state_dim] f32  (cast to bf16 in-kernel for the MXU)
    w1_ref : [state_dim, 64] bf16     b1_ref : [1, 64]  f32
    w2_ref : [64, 128]       bf16     b2_ref : [1, 128] f32
    w3t_ref: [1, 128]        f32      b3_ref : [1, 1]   f32 (SMEM scalar)
    o_ref  : [TILE_B, 1]     f32
    """
    x = x_ref[...].astype(jnp.bfloat16)

    # Layer 1: Linear(state_dim, 64) + LeakyReLU   (MXU, bf16 in / f32 acc)
    h1 = jnp.dot(x, w1_ref[...],
                 preferred_element_type=jnp.float32) + b1_ref[...]
    h1 = _leaky_relu(h1)

    # Layer 2: Linear(64, 128) + LeakyReLU         (MXU, bf16 in / f32 acc)
    h2 = jnp.dot(h1.astype(jnp.bfloat16), w2_ref[...],
                 preferred_element_type=jnp.float32) + b2_ref[...]
    h2 = _leaky_relu(h2)

    # Layer 3: Linear(128, 1) + Sigmoid. An N=1 matmul would waste the MXU, so
    # do a VPU multiply + lane (XLU) reduce instead.
    z = jnp.sum(h2 * w3t_ref[...], axis=-1, keepdims=True) + b3_ref[0, 0]
    o_ref[...] = jax.nn.sigmoid(z).astype(o_ref.dtype)


def _choose_tile_b(B, desired=8192):
    """Sublane-aligned batch tile; >=2 tiles when the batch can be split."""
    b8 = -(-B // 8) * 8                      # round up to sublane multiple
    if b8 > desired:
        return desired                       # already >= 2 tiles
    if b8 >= 2048:
        half = -(-b8 // 2)                   # split so both v7x TCs get work
        return -(-half // 8) * 8
    return b8                                # small batch: one tile


def discriminator_forward(x, params, *, tile_b=None):
    """x: [B, state_dim] float32. params: dict (math layout, see init_params).

    Returns probabilities of shape [B, 1] float32.
    """
    B, state_dim = x.shape
    if tile_b is None:
        tile_b = _choose_tile_b(B)
    tile_b = max(8, (tile_b // 8) * 8)
    num_tiles = pl.cdiv(B, tile_b)

    # Weights are tiny: cast once in the wrapper, keep them VMEM-resident.
    w1 = params["w1"].astype(jnp.bfloat16)                   # [state_dim, 64]
    b1 = params["b1"].reshape(1, -1).astype(jnp.float32)     # [1, 64]
    w2 = params["w2"].astype(jnp.bfloat16)                   # [64, 128]
    b2 = params["b2"].reshape(1, -1).astype(jnp.float32)     # [1, 128]
    w3t = params["w3"].reshape(1, -1).astype(jnp.float32)    # [1, 128]
    b3 = params["b3"].reshape(1, 1).astype(jnp.float32)      # [1, 1]

    resident = lambda arr: pl.BlockSpec(arr.shape, lambda i: (0, 0))

    # Honest cost estimate: f32 x read, f32 out write, tiny weights;
    # sigmoid ~ exp + reciprocal per row.
    flops = 2 * B * (state_dim * 64 + 64 * 128 + 128)
    transcendentals = 2 * B
    bytes_accessed = (B * state_dim * 4 + B * 4
                      + w1.size * 2 + w2.size * 2
                      + (b1.size + b2.size + w3t.size + b3.size) * 4)

    # Per-row VMEM working set: x f32 (double-buffered) + x bf16 + h1 f32/bf16
    # + h2 f32 (+ elementwise temp) + out f32 (double-buffered).
    per_row = (2 * state_dim * 4 + state_dim * 2
               + 64 * 4 + 64 * 2
               + 128 * 4 + 128 * 4
               + 2 * 4)
    vmem_limit = int(min(100 << 20,
                         max(16 << 20, 2 * tile_b * per_row + (1 << 20))))

    out = pl.pallas_call(
        discriminator_kernel,
        out_shape=jax.ShapeDtypeStruct((B, 1), jnp.float32),
        grid=(num_tiles,),
        in_specs=[
            # Native-layout x tile: last dim = full array dim, contiguous DMA.
            pl.BlockSpec((tile_b, state_dim), lambda i: (i, 0)),
            resident(w1), resident(b1),
            resident(w2), resident(b2),
            resident(w3t),
            pl.BlockSpec(memory_space=pltpu.MemorySpace.SMEM),   # b3 scalar
        ],
        out_specs=pl.BlockSpec((tile_b, 1), lambda i: (i, 0)),
        compiler_params=pltpu.CompilerParams(
            dimension_semantics=("parallel",),
            vmem_limit_bytes=vmem_limit),
        cost_estimate=pl.CostEstimate(
            flops=flops, transcendentals=transcendentals,
            bytes_accessed=bytes_accessed),
    )(x.astype(jnp.float32), w1, b1, w2, b2, w3t, b3)

    return out


def init_params(state_dim, key):
    """Deterministic init matching PyTorch nn.Linear defaults
    (U(-1/sqrt(fan_in), 1/sqrt(fan_in)) for both weight and bias).
    Stored in math layout: w [in, out], b [1, out]."""
    dims = [(state_dim, 64), (64, 128), (128, 1)]
    params = {}
    keys = jax.random.split(key, 2 * len(dims))
    for i, (fan_in, fan_out) in enumerate(dims):
        bound = 1.0 / jnp.sqrt(float(fan_in))
        w = jax.random.uniform(keys[2 * i], (fan_in, fan_out),
                               minval=-bound, maxval=bound, dtype=jnp.float32)
        b = jax.random.uniform(keys[2 * i + 1], (1, fan_out),
                               minval=-bound, maxval=bound, dtype=jnp.float32)
        params[f"w{i + 1}"] = w
        params[f"b{i + 1}"] = b
    return params


def reference_forward(x, params):
    """Pure-JAX f32 reference matching the PyTorch module."""
    h1 = _leaky_relu(x @ params["w1"] + params["b1"])
    h2 = _leaky_relu(h1 @ params["w2"] + params["b2"])
    return jax.nn.sigmoid(h2 @ params["w3"] + params["b3"])


if __name__ == "__main__":
    key = jax.random.PRNGKey(0)
    k_params, k_x = jax.random.split(key)

    batch = 8
    state_dim = 32  # small, forward-consistent choice

    params = init_params(state_dim, k_params)
    x = jax.random.normal(k_x, (batch, state_dim), dtype=jnp.float32)

    out = discriminator_forward(x, params)
    out = jax.block_until_ready(out)

    ref = reference_forward(x, params)
    assert out.shape == (batch, 1), out.shape
    max_diff = jnp.max(jnp.abs(out - ref))
    # bf16 MXU operands (f32 accumulate) => loosened tolerance vs f32 reference.
    assert jnp.allclose(out, ref, atol=2e-2, rtol=2e-2), (
        f"max abs diff {max_diff}")

    print("KERNEL_OK")
</pallas_src>

<mosaic_0001>
module attributes {stable_mosaic.version = 11 : i64} {
  func.func @discriminator_kernel(%arg0: i32, %arg1: memref<8x32xf32, #tpu.memory_space<vmem>>, %arg2: memref<32x64xbf16, #tpu.memory_space<vmem>>, %arg3: memref<1x64xf32, #tpu.memory_space<vmem>>, %arg4: memref<64x128xbf16, #tpu.memory_space<vmem>>, %arg5: memref<1x128xf32, #tpu.memory_space<vmem>>, %arg6: memref<1x128xf32, #tpu.memory_space<vmem>>, %arg7: memref<1x1xf32, #tpu.memory_space<smem>>, %arg8: memref<8x1xf32, #tpu.memory_space<vmem>>) attributes {dimension_semantics = [#tpu.dimension_semantics<parallel>], iteration_bounds = array<i64: 1>, scalar_prefetch = 0 : i64, scratch_operands = 0 : i64, tpu.core_type = #tpu.core_type<tc>, window_params = [{transform_indices = @transform_0, window_bounds = array<i64: 8, 32>}, {pipeline_mode = #tpu.pipeline_mode<synchronous>, transform_indices = @transform_1, window_bounds = array<i64: 32, 64>}, {pipeline_mode = #tpu.pipeline_mode<synchronous>, transform_indices = @transform_2, window_bounds = array<i64: 1, 64>}, {pipeline_mode = #tpu.pipeline_mode<synchronous>, transform_indices = @transform_3, window_bounds = array<i64: 64, 128>}, {pipeline_mode = #tpu.pipeline_mode<synchronous>, transform_indices = @transform_4, window_bounds = array<i64: 1, 128>}, {pipeline_mode = #tpu.pipeline_mode<synchronous>, transform_indices = @transform_5, window_bounds = array<i64: 1, 128>}, {transform_indices = @transform_6, window_bounds = array<i64: 1, 1>}, {transform_indices = @transform_7, window_bounds = array<i64: 8, 1>}]} {
    %c0 = arith.constant 0 : index
    %c0_0 = arith.constant 0 : index
    %0 = vector.load %arg1[%c0, %c0_0] : memref<8x32xf32, #tpu.memory_space<vmem>>, vector<8x32xf32>
    %1 = arith.truncf %0 : vector<8x32xf32> to vector<8x32xbf16>
    %c0_1 = arith.constant 0 : index
    %c0_2 = arith.constant 0 : index
    %2 = vector.load %arg2[%c0_1, %c0_2] : memref<32x64xbf16, #tpu.memory_space<vmem>>, vector<32x64xbf16>
    %cst = arith.constant dense<0.000000e+00> : vector<8x64xf32>
    %3 = tpu.matmul %1, %2, %cst {dimension_numbers = #tpu.dot_dimension_numbers<[1], [0], [0], [1], [0, 0, 1, 1], [], []>} : vector<8x32xbf16>, vector<32x64xbf16>, vector<8x64xf32> -> vector<8x64xf32>
    %c0_3 = arith.constant 0 : index
    %c0_4 = arith.constant 0 : index
    %4 = vector.load %arg3[%c0_3, %c0_4] : memref<1x64xf32, #tpu.memory_space<vmem>>, vector<1x64xf32>
    %5 = vector.broadcast %4 : vector<1x64xf32> to vector<8x64xf32>
    %6 = arith.addf %3, %5 : vector<8x64xf32>
    %cst_5 = arith.constant 0.000000e+00 : f32
    %7 = vector.broadcast %cst_5 : f32 to vector<8x64xf32>
    %8 = arith.cmpf ogt, %6, %7 : vector<8x64xf32>
    %cst_6 = arith.constant 0.00999999977 : f32
    %9 = vector.broadcast %cst_6 : f32 to vector<8x64xf32>
    %10 = arith.mulf %9, %6 : vector<8x64xf32>
    %11 = arith.select %8, %6, %10 : vector<8x64xi1>, vector<8x64xf32>
    %12 = arith.truncf %11 : vector<8x64xf32> to vector<8x64xbf16>
    %c0_7 = arith.constant 0 : index
    %c0_8 = arith.constant 0 : index
    %13 = vector.load %arg4[%c0_7, %c0_8] : memref<64x128xbf16, #tpu.memory_space<vmem>>, vector<64x128xbf16>
    %cst_9 = arith.constant dense<0.000000e+00> : vector<8x128xf32>
    %14 = tpu.matmul %12, %13, %cst_9 {dimension_numbers = #tpu.dot_dimension_numbers<[1], [0], [0], [1], [0, 0, 1, 1], [], []>} : vector<8x64xbf16>, vector<64x128xbf16>, vector<8x128xf32> -> vector<8x128xf32>
    %c0_10 = arith.constant 0 : index
    %c0_11 = arith.constant 0 : index
    %15 = vector.load %arg5[%c0_10, %c0_11] : memref<1x128xf32, #tpu.memory_space<vmem>>, vector<1x128xf32>
    %16 = vector.broadcast %15 : vector<1x128xf32> to vector<8x128xf32>
    %17 = arith.addf %14, %16 : vector<8x128xf32>
    %cst_12 = arith.constant 0.000000e+00 : f32
    %18 = vector.broadcast %cst_12 : f32 to vector<8x128xf32>
    %19 = arith.cmpf ogt, %17, %18 : vector<8x128xf32>
    %cst_13 = arith.constant 0.00999999977 : f32
    %20 = vector.broadcast %cst_13 : f32 to vector<8x128xf32>
    %21 = arith.mulf %20, %17 : vector<8x128xf32>
    %22 = arith.select %19, %17, %21 : vector<8x128xi1>, vector<8x128xf32>
    %c0_14 = arith.constant 0 : index
    %c0_15 = arith.constant 0 : index
    %23 = vector.load %arg6[%c0_14, %c0_15] : memref<1x128xf32, #tpu.memory_space<vmem>>, vector<1x128xf32>
    %24 = vector.broadcast %23 : vector<1x128xf32> to vector<8x128xf32>
    %25 = arith.mulf %22, %24 : vector<8x128xf32>
    %cst_16 = arith.constant dense<0.000000e+00> : vector<8xf32>
    %26 = vector.multi_reduction <add>, %25, %cst_16 [1] : vector<8x128xf32> to vector<8xf32>
    %27 = vector.shape_cast %26 : vector<8xf32> to vector<8x1xf32>
    %c0_17 = arith.constant 0 : index
    %c0_18 = arith.constant 0 : index
    %28 = memref.load %arg7[%c0_17, %c0_18] : memref<1x1xf32, #tpu.memory_space<smem>>
    %29 = vector.broadcast %28 : f32 to vector<8x1xf32>
    %30 = arith.addf %27, %29 : vector<8x1xf32>
    %31 = arith.negf %30 : vector<8x1xf32>
    %32 = math.exp %31 : vector<8x1xf32>
    %cst_19 = arith.constant 1.000000e+00 : f32
    %33 = vector.broadcast %cst_19 : f32 to vector<8x1xf32>
    %34 = arith.addf %33, %32 : vector<8x1xf32>
    %35 = arith.divf %33, %34 : vector<8x1xf32>
    %c0_20 = arith.constant 0 : index
    %c0_21 = arith.constant 0 : index
    %36 = vector.load %arg8[%c0_20, %c0_21] : memref<8x1xf32, #tpu.memory_space<vmem>>, vector<8x1xf32>
    tpu.vector_store %arg8[%c0_20, %c0_21], %35 {strides = array<i32>} : memref<8x1xf32, #tpu.memory_space<vmem>>, vector<8x1xf32>,
    return
  }
  func.func @transform_0(%arg0: i32) -> (i32, i32) {
    %c0_i32 = arith.constant 0 : i32
    %c0_i32_0 = arith.constant 0 : i32
    return %arg0, %c0_i32 : i32, i32
  }
  func.func @transform_1(%arg0: i32) -> (i32, i32) {
    %c0_i32 = arith.constant 0 : i32
    %c0_i32_0 = arith.constant 0 : i32
    %c0_i32_1 = arith.constant 0 : i32
    return %c0_i32, %c0_i32_0 : i32, i32
  }
  func.func @transform_2(%arg0: i32) -> (i32, i32) {
    %c0_i32 = arith.constant 0 : i32
    %c0_i32_0 = arith.constant 0 : i32
    %c0_i32_1 = arith.constant 0 : i32
    return %c0_i32, %c0_i32_0 : i32, i32
  }
  func.func @transform_3(%arg0: i32) -> (i32, i32) {
    %c0_i32 = arith.constant 0 : i32
    %c0_i32_0 = arith.constant 0 : i32
    %c0_i32_1 = arith.constant 0 : i32
    return %c0_i32, %c0_i32_0 : i32, i32
  }
  func.func @transform_4(%arg0: i32) -> (i32, i32) {
    %c0_i32 = arith.constant 0 : i32
    %c0_i32_0 = arith.constant 0 : i32
    %c0_i32_1 = arith.constant 0 : i32
    return %c0_i32, %c0_i32_0 : i32, i32
  }
  func.func @transform_5(%arg0: i32) -> (i32, i32) {
    %c0_i32 = arith.constant 0 : i32
    %c0_i32_0 = arith.constant 0 : i32
    %c0_i32_1 = arith.constant 0 : i32
    return %c0_i32, %c0_i32_0 : i32, i32
  }
  func.func @transform_6(%arg0: i32) -> (i32, i32) {
    %c0_i32 = arith.constant 0 : i32
    %c0_i32_0 = arith.constant 0 : i32
    %c0_i32_1 = arith.constant 0 : i32
    return %c0_i32, %c0_i32_0 : i32, i32
  }
  func.func @transform_7(%arg0: i32) -> (i32, i32) {
    %c0_i32 = arith.constant 0 : i32
    %c0_i32_0 = arith.constant 0 : i32
    return %arg0, %c0_i32 : i32, i32
  }
}

</mosaic_0001>

<bundles_post_ra>
// kernel: tpu_custom_call.1
= control target key start
LH: loop header
LB: loop body
LE: loop exit
PB: predicated region body
PF: predicated region fallthrough
CT: control target
= control target key end

     0   :  { %13 = vsyncpa [#allocation4], 0  ;;  %s484_s0 = inlined_call_operand.hbm [shape: f32[8,32], index: 0, kind: input, shape index: {}]   ;;  %s485_s1 = inlined_call_operand.hbm [shape: bf16[32,64], index: 1, kind: input, shape index: {}]   ;;  %s486_s2 = inlined_call_operand.vmem [shape: f32[1,64], index: 2, kind: input, shape index: {}]   ;;  %s487_s3 = inlined_call_operand.hbm [shape: bf16[64,128], index: 3, kind: input, shape index: {}]   ;;  %s488_s4 = inlined_call_operand.vmem [shape: f32[1,128], index: 4, kind: input, shape index: {}]   ;;  %s489_s5 = inlined_call_operand.vmem [shape: f32[1,128], index: 5, kind: input, shape index: {}]   ;;  %s490_s6 = inlined_call_operand.<no memory space> [shape: f32[1,1], index: 6, kind: input, shape index: {}]   ;;  %s491_s7 = inlined_call_operand.vmem [shape: f32[8,1], index: 7, kind: output, shape index: {}]  }
   0x1   :  { %14 = vsyncpa [#allocation6], 0  ;;  %s380_s24 = smov [#allocation5]   ;;  %s310_s28 = scalar_lea.hbm %s485_s1, 256 }
   0x2   :  { %s30_s25 = sshll.u32 %s380_s24, 4  ;;  %p311_p0 = scmp.ne.s32.totalorder %s485_s1, %s310_s28  ;;  %s31_s25 = int_to_ptr.vmem [resolvable:$true] %s30_s25 }
   0x3   :  { %p314_p1 = scmp.lt.u32.totalorder %s310_s28, %s485_s1 }
   0x5   :  { %p316_p2 = pnand %p314_p1, %p311_p0 }
   0x7   :  { %319 = shalt.err (!%p316_p2)
}
   0x8   :  { %s320_s10 = scalar_lea.vmem %s31_s25, 256  ;;  %p325_p4 = scmp.lt.s32.totalorder %s31_s25, %s31_s25 }
   0x9   :  { %p321_p3 = scmp.ne.s32.totalorder %s31_s25, %s320_s10  ;;  %p326_p5 = scmp.lt.s32.totalorder %s320_s10, %s320_s10 }
   0xb   :  { %p327_p6 = por %p326_p5, %p325_p4 }
   0xd   :  { %p328_p7 = pnand %p327_p6, %p321_p3 }
   0xf   :  { %331 = shalt.err (!%p328_p7)
}
  0x10   :  { %s381_s11 = smov 64   ;;  %s382_s12 = smov 4  }
  0x11   :  { %36 = dma.hbm_to_vmem [thread:$0]  %s485_s1, 256, %s31_s25, [#allocation6], %s381_s11, %s381_s11, %s382_s12  }
  0x12   :  { %s383_s15 = smov [#allocation3]   ;;  %s384_s17 = smov [#allocation7]  }
  0x13   :  { %s21_s16 = sshll.u32 %s383_s15, 4  ;;  %s44_s18 = sshll.u32 %s384_s17, 4  ;;  %s22_s16 = int_to_ptr.vmem [resolvable:$true] %s21_s16  ;;  %s45_s18 = int_to_ptr.vmem [resolvable:$true] %s44_s18 }
  0x14   :  { %s332_s21 = scalar_lea.hbm %s484_s0, 128 }
  0x15   :  { %p333_p8 = scmp.ne.s32.totalorder %s484_s0, %s332_s21  ;;  %p336_p9 = scmp.lt.u32.totalorder %s332_s21, %s484_s0 }
  0x17   :  { %p338_p10 = pnand %p336_p9, %p333_p8 }
  0x19   :  { %341 = shalt.err (!%p338_p10)
}
  0x1a   :  { %s342_s1 = scalar_lea.vmem %s22_s16, 128  ;;  %p347_p12 = scmp.lt.s32.totalorder %s22_s16, %s22_s16 }
  0x1b   :  { %p343_p11 = scmp.ne.s32.totalorder %s22_s16, %s342_s1  ;;  %p348_p13 = scmp.lt.s32.totalorder %s342_s1, %s342_s1 }
  0x1d   :  { %p349_p0 = por %p348_p13, %p347_p12 }
  0x1f   :  { %p350_p1 = pnand %p349_p0, %p343_p11 }
  0x21   :  { %353 = shalt.err (!%p350_p1)
}
  0x22   :  { %24 = dma.hbm_to_vmem [thread:$0]  %s484_s0, 128, %s22_s16, [#allocation4]  }
  0x23   :  { %s354_s30 = scalar_lea.hbm %s487_s3, 512 }
  0x24   :  { %p355_p2 = scmp.ne.s32.totalorder %s487_s3, %s354_s30  ;;  %p358_p3 = scmp.lt.u32.totalorder %s354_s30, %s487_s3 }
  0x26   :  { %p360_p4 = pnand %p358_p3, %p355_p2 }
  0x28   :  { %363 = shalt.err (!%p360_p4)
}
  0x29   :  { %s364_s14 = scalar_lea.vmem %s45_s18, 512  ;;  %p369_p6 = scmp.lt.s32.totalorder %s45_s18, %s45_s18 }
  0x2a   :  { %p365_p5 = scmp.ne.s32.totalorder %s45_s18, %s364_s14  ;;  %p370_p7 = scmp.lt.s32.totalorder %s364_s14, %s364_s14 }
  0x2c   :  { %p371_p8 = por %p370_p7, %p369_p6 }
  0x2e   :  { %p372_p9 = pnand %p371_p8, %p365_p5 }
  0x30   :  { %375 = shalt.err (!%p372_p9)
}
  0x31   :  { %50 = dma.hbm_to_vmem [thread:$0]  %s487_s3, 512, %s45_s18, [#allocation6], %s381_s11, %s381_s11, %s382_s12  }
  0x32   :  { %376 = dma.done.wait [#allocation4], 128  }
  0x33   :  { %377 = vsyncadd [#allocation4], 4294967168 }
  0x34   :  { %378 = dma.done.wait [#allocation6], 768  }
  0x35   :  { %379 = vsyncadd [#allocation6], 4294966528  ;;  %v385_v0 = vmov 0.0   ;;  %vm386_vm0 = vmmov 0   ;;  %v300_v1 = vld [vmem:[#allocation5] sm:$0xff]   ;;  %v301_v2 = vld [vmem:[#allocation5 + $0x8] sm:$0xff]   ;;  %v237_v28 = vstv %s490_s6 }
  0x36   :  { %273 = vmatprep.subr.bf16.mxu0 %v385_v0  ;;  %277 = vmatprep.mubr.msk.bf16.mxu0 %vm386_vm0, %v385_v0  ;;  %v67_v3 = vld [vmem:[#allocation3] sm:$0xff]  ;;  %v302_v4 = vld [vmem:[#allocation7] sm:$0xff]   ;;  %vm92_vm1 = vcmask 261120   ;;  %v304_v7 = vld [vmem:[#allocation7 + $0x10] sm:$0xff]   ;;  %vm179_vm3 = vcmask 523264   ;;  %vm245_vm5 = vcmask 7168  }
  0x37   :  { %281 = vmatprep.subr.bf16.mxu1 %v385_v0  ;;  %289 = vmatprep.mubr.msk.bf16.mxu1 %vm386_vm0, %v385_v0  ;;  %v303_v5 = vld [vmem:[#allocation7 + $0x8] sm:$0xff]   ;;  %v68_v6 = vpack.c.bf16 %v67_v3, %v67_v3  ;;  %v305_v8 = vld [vmem:[#allocation7 + $0x18] sm:$0xff]  }
  0x38   :  { %274 = vmatpush3.bf16.msra.mxu0 %v300_v1  ;;  %282 = vmatpush3.bf16.msra.mxu1 %v302_v4  ;;  %v253_v9 = vld [vmem:[%s486_s2] ss:$0 sm:$0xff] }
  0x39   :  { %275 = vmatprep.subr.bf16.mxu0 %v385_v0  ;;  %283 = vmatprep.subr.bf16.mxu1 %v385_v0  ;;  %v257_v18 = vld [vmem:[%s488_s4] ss:$0 sm:$0xff] }
  0x3a   :  { %v263_v25 = vld [vmem:[%s489_s5] ss:$0 sm:$0xff] }
  0x3c   :  { %276 = vmatpush3.bf16.msra.mxu0 %v301_v2  ;;  %284 = vmatpush3.bf16.msra.mxu1 %v303_v5 }
  0x3d   :  { %285 = vmatprep.subr.bf16.mxu1 %v385_v0 }
  0x3f   :  { %278 = vmatmul.mubr.msk.bf16.vlgmr.msra.gmra.mrb[0].mxu0 %vm92_vm1, %v68_v6 }
  0x40   :  { %286 = vmatpush3.bf16.msra.mxu1 %v304_v7 }
  0x41   :  { %287 = vmatprep.subr.bf16.mxu1 %v385_v0 }
  0x44   :  { %288 = vmatpush3.bf16.msra.mxu1 %v305_v8 }
 0x112   :  { %v130_v10 = vpop.f32.mrb[0].mxu0 }
 0x113   :  { %v131_v11 = vadd.f32 %v253_v9, %v130_v10  ;;  %v279_v12 = vpop.f32.mrb[1].mxu0 }
 0x114   :  { %v133_v13 = vpop.f32.mrb[2].mxu0 }
 0x115   :  { %vm136_vm2 = vcmp.gt.f32.partialorder %v131_v11, 0.0  ;;  %v137_v14 = vmul.f32 0.01, %v131_v11  ;;  %v280_v15 = vpop.f32.mrb[3].mxu0 }
 0x117   :  { %v138_v16 = vsel %vm136_vm2, %v131_v11, %v137_v14 }
 0x118   :  { %v139_v17 = vpack.c.bf16 %v138_v16, %v138_v16 }
 0x11a   :  { %290 = vmatmul.mubr.msk.bf16.vlgmr.msra.gmra.mrb[0].mxu1 %vm179_vm3, %v139_v17 }
 0x1ed   :  { %v217_v19 = vpop.f32.mrb[0].mxu1 }
 0x1ee   :  { %v218_v20 = vadd.f32 %v257_v18, %v217_v19  ;;  %v291_v21 = vpop.f32.mrb[1].mxu1 }
 0x1ef   :  { %v220_v22 = vpop.f32.mrb[2].mxu1 }
 0x1f0   :  { %v224_v23 = vmul.f32 0.01, %v218_v20  ;;  %v292_v24 = vpop.f32.mrb[3].mxu1  ;;  %vm223_vm4 = vcmp.gt.f32.partialorder %v218_v20, 0.0 }
 0x1f2   :  { %v225_v26 = vsel %vm223_vm4, %v218_v20, %v224_v23 }
 0x1f3   :  { %v233_v27 = vmul.f32 %v263_v25, %v225_v26 }
 0x1f5   :  { %234 = vadd.xlane.f32.xlu0 %v233_v27 }
 0x282   :  { %v235_v29 = vpop.xlane.xlu0 %234 }
 0x283   :  { %v238_v30 = vadd.f32 %v237_v28, %v235_v29 }
 0x285   :  { %v264_v31 = vmul.f32 -1.442695, %v238_v30 }
 0x287   :  { %306 = vpow2.f32 %v264_v31 }
 0x291   :  { %v307_v32 = vpop.eup %306 }
 0x292   :  { %v242_v33 = vadd.f32 1.0, %v307_v32 }
 0x294   :  { %308 = vrcp.f32 %v242_v33 }
 0x29e   :  { %v309_v34 = vpop.eup %308 }
 0x29f   :  { %246 = vst.msk [vmem:[%s491_s7] sm:$0xff] %vm245_vm5, %v309_v34 }
 0x2a0   :  { %251 = vsyncpa [#allocation4], 1 }
 0x2a1   :  { %252 = vsyncpa [#allocation6], 1 }

</bundles_post_ra>
